<compile_context>
chip_gen: v7x
topology: tpu7x:2x2x1
jax: 0.10.0
libtpu: 0.0.40
codegen_flags: <defaults>
</compile_context>

<pallas_src>
import functools
import math

import jax
import jax.numpy as jnp
from jax.experimental import pallas as pl
from jax.experimental.pallas import tpu as pltpu

_BN_EPS = 1e-5


# ---------------------------------------------------------------------------
# pltpu.roll direction probe (one tiny kernel, run once, cached)
# ---------------------------------------------------------------------------
_ROLL_SIGN = []


def _roll_sign():
    """+1 if pltpu.roll matches jnp.roll (out[i] = x[i - shift]), -1 if it
    rotates the other way.  Resolved empirically so the conv halo shifts are
    correct under either convention."""
    if not _ROLL_SIGN:
        def probe(x_ref, o_ref):
            o_ref[...] = pltpu.roll(x_ref[...], shift=1, axis=1)

        x = jnp.broadcast_to(jax.lax.iota(jnp.float32, 128)[None, :], (8, 128))
        y = pl.pallas_call(
            probe, out_shape=jax.ShapeDtypeStruct((8, 128), jnp.float32))(x)
        v = float(y[0, 1])
        if v == 0.0:
            _ROLL_SIGN.append(1)     # jnp.roll semantics
        elif v == 2.0:
            _ROLL_SIGN.append(-1)    # left-rotate semantics
        else:
            raise RuntimeError(f"unexpected pltpu.roll semantics (probe={v})")
    return _ROLL_SIGN[0]


# ---------------------------------------------------------------------------
# in-kernel helpers (operate on (C, N*H*W) lane-dense values)
# ---------------------------------------------------------------------------
def _hw_index(N, H, W):
    """(1, M) int32 row / column coordinates for a flattened N*H*W axis."""
    M = N * H * W
    pos = jax.lax.broadcasted_iota(jnp.int32, (1, M), 1)
    r = pos % (H * W)
    return r // W, r % W


def _shift_tap(x, dh, dw, H, W, h_idx, w_idx, roll_sign):
    """out[c, m] = x at spatial offset (dh, dw), zero outside the image."""
    if dh == 0 and dw == 0:
        return x
    M = x.shape[1]
    s = dh * W + dw
    if M >= 128:
        amt = (-s) % M if roll_sign > 0 else s % M
        shifted = pltpu.roll(x, shift=amt, axis=1)
    else:
        # Bottleneck level (flat width < one lane tile): shift via a tiny
        # iota-built 0/1 selection matmul instead of a sub-128-lane rotate.
        src = jax.lax.broadcasted_iota(jnp.int32, (M, M), 0)
        dst = jax.lax.broadcasted_iota(jnp.int32, (M, M), 1)
        sel = (src == dst + s).astype(x.dtype)
        shifted = jnp.dot(x, sel, preferred_element_type=jnp.float32)
    valid = ((h_idx + dh >= 0) & (h_idx + dh < H)
             & (w_idx + dw >= 0) & (w_idx + dw < W))
    return jnp.where(valid, shifted, 0.0)


def _conv3x3(x, w_ref, H, W, h_idx, w_idx, roll_sign):
    """3x3 'same' conv as a single im2col MXU matmul (K = 9*Cin).
    No conv bias: the training-mode BN that always follows subtracts the batch
    mean, which cancels any per-channel constant exactly."""
    taps = []
    for kh in range(3):
        for kw in range(3):
            taps.append(_shift_tap(x, kh - 1, kw - 1, H, W,
                                   h_idx, w_idx, roll_sign))
    patches = jnp.concatenate(taps, axis=0)               # (9*Cin, M)
    return jnp.dot(w_ref[...], patches, preferred_element_type=jnp.float32)


def _bn_relu(y, gamma, beta):
    """Training-mode BatchNorm (batch stats over N*H*W, biased var) + ReLU."""
    m = y.shape[1]
    mean = jnp.sum(y, axis=1, keepdims=True) * (1.0 / m)
    yc = y - mean
    var = jnp.sum(yc * yc, axis=1, keepdims=True) * (1.0 / m)
    inv = jax.lax.rsqrt(var + _BN_EPS)
    return jnp.maximum(yc * inv * gamma + beta, 0.0)


def _maxpool2x2(x, N, H, W):
    """2x2 stride-2 max pool on a (C, N*H*W) value."""
    C = x.shape[0]
    Hp, Wp = H // 2, W // 2
    xh = jnp.max(x.reshape(C, N * H, Wp, 2), axis=3)       # pairs along W
    xv = jnp.max(xh.reshape(C, N * Hp, 2, Wp), axis=2)     # pairs along H
    return xv.reshape(C, N * Hp * Wp)


def _interleave(a, b, axis):
    """out[..,2i,..]=a[..,i,..]; out[..,2i+1,..]=b[..,i,..]."""
    ax = axis % a.ndim
    exp = a.shape[:ax + 1] + (2,) + a.shape[ax + 1:]
    out = a.shape[:ax] + (2 * a.shape[ax],) + a.shape[ax + 1:]
    a_up = jnp.broadcast_to(jnp.expand_dims(a, ax + 1), exp).reshape(out)
    b_up = jnp.broadcast_to(jnp.expand_dims(b, ax + 1), exp).reshape(out)
    sel = jax.lax.broadcasted_iota(jnp.int32, out, ax)
    return jnp.where(sel % 2 == 0, a_up, b_up)


def _upsample2x(taps, bias, N, H1, W1):
    """ConvTranspose2d(k=2, s=2) spatial scatter of the 4 parity taps.
    taps[t] (t = 2*dh + dw) is (Ct, N*H1*W1); returns (Ct, N*2H1*2W1)."""
    ct = taps[0].shape[0]
    t3 = [(t + bias).reshape(ct, N * H1, W1) for t in taps]
    r0 = _interleave(t3[0], t3[1], axis=2)      # dh = 0 row stream
    r1 = _interleave(t3[2], t3[3], axis=2)      # dh = 1 row stream
    up = _interleave(r0, r1, axis=1)            # rows: 2*(n*H1+h)+dh = n*H2+hh
    return up.reshape(ct, N * (2 * H1) * (2 * W1))


# ---------------------------------------------------------------------------
# the single fused UNet kernel
# ---------------------------------------------------------------------------
def _make_fused_kernel(N, H, W, n_layers, roll_sign):
    def kernel(*refs):
        x_ref = refs[0]
        bn_ref = refs[-3]        # (sum Cout, 2) packed [gamma, beta] rows
        bias_ref = refs[-2]      # (sum bias,  1) packed ConvT / outc biases
        o_ref = refs[-1]
        wrefs = refs[1:-3]

        cur_w, cur_bn, cur_b = [0], [0], [0]

        def next_w():
            r = wrefs[cur_w[0]]
            cur_w[0] += 1
            return r

        def next_bn(c):
            o = cur_bn[0]
            cur_bn[0] += c
            gb = bn_ref[o:o + c, :]
            return gb[:, 0:1], gb[:, 1:2]

        def next_bias(c):
            o = cur_b[0]
            cur_b[0] += c
            return bias_ref[o:o + c, :]

        idx_cache = {}

        def hw_idx(h, w):
            if (h, w) not in idx_cache:
                idx_cache[(h, w)] = _hw_index(N, h, w)
            return idx_cache[(h, w)]

        def double_conv(x, h, w):
            hi, wi = hw_idx(h, w)
            w1 = next_w()
            w2 = next_w()
            g1, b1 = next_bn(w1.shape[0])
            g2, b2 = next_bn(w2.shape[0])
            y = _bn_relu(_conv3x3(x, w1, h, w, hi, wi, roll_sign), g1, b1)
            return _bn_relu(_conv3x3(y, w2, h, w, hi, wi, roll_sign), g2, b2)

        # ------------------------ encoder ------------------------
        cur = double_conv(x_ref[...], H, W)                       # inc
        feats = [(cur, H, W)]
        h, w = H, W
        for _ in range(n_layers):
            pooled = _maxpool2x2(feats[-1][0], N, h, w)
            h, w = h // 2, w // 2
            feats.append((double_conv(pooled, h, w), h, w))       # down_k

        # ------------------------ decoder ------------------------
        feats.reverse()
        cur, ch, cw = feats[0]
        skips = feats[1:]
        for j in range(n_layers):
            x2, h2, w2 = skips[j]
            # TODO(synk): odd-size F.pad branch unsupported (all sizes even).
            assert (h2, w2) == (2 * ch, 2 * cw)
            wt = next_w()                                    # (4*Ct, Ct)
            ct = wt.shape[1]
            bt = next_bias(ct)                               # (Ct, 1)
            # ConvTranspose2d(k=2, s=2): one matmul produces all 4 parity taps.
            taps_all = jnp.dot(wt[...], cur, preferred_element_type=jnp.float32)
            taps = [taps_all[k * ct:(k + 1) * ct, :] for k in range(4)]
            up = _upsample2x(taps, bt, N, ch, cw)            # (Ct, N*h2*w2)
            cur = double_conv(jnp.concatenate([x2, up], axis=0), h2, w2)
            ch, cw = h2, w2

        # ------------------------ outc (1x1) ------------------------
        w_o = next_w()
        b_o = next_bias(w_o.shape[0])
        o_ref[...] = jnp.dot(w_o[...], cur,
                             preferred_element_type=jnp.float32) + b_o

    return kernel


# ---------------------------------------------------------------------------
# wrapper: flatten params, pack small per-channel vectors, one pallas_call
# ---------------------------------------------------------------------------
@functools.partial(jax.jit, static_argnames=('n_layers', 'roll_sign'))
def _unet_forward_impl(x_nchw, params, n_layers, roll_sign):
    N, C, H, W = x_nchw.shape
    x_cf = jnp.transpose(x_nchw, (1, 0, 2, 3)).reshape(C, N * H * W)

    # Pad the input channels (and inc conv1's im2col weight) to a multiple of
    # 8 so every in-kernel sublane concatenation is tile aligned.
    c_pad = ((C + 7) // 8) * 8
    inc_p = dict(params['inc'])
    if c_pad != C:
        x_cf = jnp.concatenate(
            [x_cf, jnp.zeros((c_pad - C, x_cf.shape[1]), x_cf.dtype)], axis=0)
        c1 = inc_p['w1'].shape[0]
        w1 = inc_p['w1'].reshape(c1, 9, C)
        w1 = jnp.pad(w1, ((0, 0), (0, 0), (0, c_pad - C))).reshape(c1, 9 * c_pad)
        inc_p['w1'] = w1

    weights, bn_rows, bias_rows = [], [], []

    def add_double_conv(p):
        weights.extend([p['w1'], p['w2']])
        bn_rows.append(jnp.stack([p['g1'], p['be1']], axis=1))   # (Cout, 2)
        bn_rows.append(jnp.stack([p['g2'], p['be2']], axis=1))

    add_double_conv(inc_p)
    for i in range(n_layers):
        add_double_conv(params[f'down{i + 1}'])
    for idx in reversed(range(n_layers)):
        p = params[f'up{idx + 1}']
        weights.append(p['wt'])
        bias_rows.append(p['tb'].reshape(-1, 1))
        add_double_conv(p['conv'])
    weights.append(params['outc_w'])
    bias_rows.append(params['outc_b'].reshape(-1, 1))

    bn_pack = jnp.concatenate(bn_rows, axis=0)       # (sum Cout, 2)
    bias_pack = jnp.concatenate(bias_rows, axis=0)   # (sum bias,  1)

    n_cls = params['outc_w'].shape[0]
    out_flat = pl.pallas_call(
        _make_fused_kernel(N, H, W, n_layers, roll_sign),
        out_shape=jax.ShapeDtypeStruct((n_cls, N * H * W), jnp.float32),
    )(x_cf, *weights, bn_pack, bias_pack)
    return jnp.transpose(out_flat.reshape(n_cls, N, H, W), (1, 0, 2, 3))


def unet_forward(x_nchw, params, n_layers):
    return _unet_forward_impl(x_nchw, params,
                              n_layers=n_layers, roll_sign=_roll_sign())


# ---------------------------------------------------------------------------
# parameter init (PyTorch layouts converted to kernel layouts)
# ---------------------------------------------------------------------------
def _uniform(key, shape, bound):
    return jax.random.uniform(key, shape, jnp.float32, -bound, bound)


def _init_conv3x3(key, cin, cout):
    kw, kb = jax.random.split(key)
    bound = 1.0 / math.sqrt(cin * 9)
    w = _uniform(kw, (cout, cin, 3, 3), bound)                      # torch OIHW
    b = _uniform(kb, (cout,), bound)
    w_im2col = jnp.transpose(w, (0, 2, 3, 1)).reshape(cout, 9 * cin)
    return w_im2col, b


def _init_conv_t2x2(key, cin, cout):
    kw, kb = jax.random.split(key)
    bound = 1.0 / math.sqrt(cout * 4)
    w = _uniform(kw, (cin, cout, 2, 2), bound)                      # torch (I,O,kH,kW)
    b = _uniform(kb, (cout,), bound)
    wt = jnp.transpose(w, (2, 3, 1, 0)).reshape(4 * cout, cin)      # rows t*Ct+o
    return wt, b


def _init_conv1x1(key, cin, cout):
    kw, kb = jax.random.split(key)
    bound = 1.0 / math.sqrt(cin)
    w = _uniform(kw, (cout, cin, 1, 1), bound)
    b = _uniform(kb, (cout,), bound)
    return w[:, :, 0, 0], b


def init_double_conv(key, cin, cout):
    k1, k2 = jax.random.split(key)
    w1, b1 = _init_conv3x3(k1, cin, cout)
    w2, b2 = _init_conv3x3(k2, cout, cout)
    ones = jnp.ones((cout,), jnp.float32)
    zeros = jnp.zeros((cout,), jnp.float32)
    return dict(w1=w1, b1=b1, g1=ones, be1=zeros,
                w2=w2, b2=b2, g2=ones, be2=zeros)


def init_unet_params(key, n_channels, n_classes, topology):
    first = topology[0]
    L = len(topology)
    keys = jax.random.split(key, 2 * L + 2)
    params = {'inc': init_double_conv(keys[0], n_channels, first)}
    up_topo = [first]
    for idx in range(L):
        in_dim = topology[idx]
        out_dim = topology[idx + 1] if idx != L - 1 else topology[idx]
        params[f'down{idx + 1}'] = init_double_conv(keys[1 + idx], in_dim, out_dim)
        up_topo.append(out_dim)
    for j, idx in enumerate(reversed(range(L))):
        x2_idx = idx - 1 if idx != 0 else idx
        in_dim = up_topo[idx] * 2
        out_dim = up_topo[x2_idx]
        ku, kc = jax.random.split(keys[1 + L + j])
        wt, tb = _init_conv_t2x2(ku, in_dim // 2, in_dim // 2)
        params[f'up{idx + 1}'] = dict(wt=wt, tb=tb,
                                      conv=init_double_conv(kc, in_dim, out_dim))
    ow, ob = _init_conv1x1(keys[-1], first, n_classes)
    params['outc_w'] = ow
    params['outc_b'] = ob
    return params


# ---------------------------------------------------------------------------
# pure-JAX (XLA) reference -- keeps the conv biases the kernel drops, so the
# check also verifies the "bias cancelled by training-mode BN" optimization.
# ---------------------------------------------------------------------------
_HI = jax.lax.Precision.HIGHEST


def _ref_conv3x3(x, w_im2col, b):
    n, cin, h, w = x.shape
    cout = w_im2col.shape[0]
    wk = w_im2col.reshape(cout, 9, cin)
    xp = jnp.pad(x, ((0, 0), (0, 0), (1, 1), (1, 1)))
    out = jnp.zeros((n, cout, h, w), jnp.float32)
    for kh in range(3):
        for kw in range(3):
            out = out + jnp.einsum('oc,nchw->nohw', wk[:, 3 * kh + kw, :],
                                   xp[:, :, kh:kh + h, kw:kw + w], precision=_HI)
    return out + b[None, :, None, None]


def _ref_convT2x2(x, wt, tb):
    n, cin, h, w = x.shape
    ct = wt.shape[1]
    wk = wt.reshape(2, 2, ct, cin)
    up = jnp.zeros((n, ct, 2 * h, 2 * w), jnp.float32)
    for dh in range(2):
        for dw in range(2):
            y = jnp.einsum('oc,nchw->nohw', wk[dh, dw], x, precision=_HI)
            up = up.at[:, :, dh::2, dw::2].set(y)
    return up + tb[None, :, None, None]


def _ref_bn_relu(x, g, be):
    mean = jnp.mean(x, axis=(0, 2, 3), keepdims=True)
    var = jnp.mean((x - mean) ** 2, axis=(0, 2, 3), keepdims=True)
    xn = (x - mean) * jax.lax.rsqrt(var + _BN_EPS)
    return jnp.maximum(xn * g[None, :, None, None] + be[None, :, None, None], 0.0)


def _ref_double_conv(x, p):
    x = _ref_bn_relu(_ref_conv3x3(x, p['w1'], p['b1']), p['g1'], p['be1'])
    return _ref_bn_relu(_ref_conv3x3(x, p['w2'], p['b2']), p['g2'], p['be2'])


def _ref_unet(x, params, n_layers):
    cur = _ref_double_conv(x, params['inc'])
    feats = [cur]
    for idx in range(n_layers):
        t = feats[-1]
        n_, c_, h_, w_ = t.shape
        pooled = t.reshape(n_, c_, h_ // 2, 2, w_ // 2, 2).max(axis=(3, 5))
        feats.append(_ref_double_conv(pooled, params[f'down{idx + 1}']))
    feats.reverse()
    cur = feats[0]
    skips = feats[1:]
    for j, idx in enumerate(reversed(range(n_layers))):
        p = params[f'up{idx + 1}']
        up = _ref_convT2x2(cur, p['wt'], p['tb'])
        cur = _ref_double_conv(jnp.concatenate([skips[j], up], axis=1), p['conv'])
    return (jnp.einsum('oc,nchw->nohw', params['outc_w'], cur, precision=_HI)
            + params['outc_b'][None, :, None, None])


# ---------------------------------------------------------------------------
if __name__ == "__main__":
    key = jax.random.PRNGKey(0)
    kx, kp = jax.random.split(key)

    N, C_IN, H, W = 2, 4, 16, 16        # NCHW input, as in the torch module
    N_CLASSES = 2
    TOPOLOGY = (8, 16)                  # cfg.MODEL.TOPOLOGY

    x = jax.random.normal(kx, (N, C_IN, H, W), jnp.float32)
    params = init_unet_params(kp, C_IN, N_CLASSES, TOPOLOGY)

    out = unet_forward(x, params, n_layers=len(TOPOLOGY))
    out = jax.block_until_ready(out)

    assert out.shape == (N, N_CLASSES, H, W), out.shape
    assert bool(jnp.all(jnp.isfinite(out)))

    # Cross-check the fused Pallas forward against the pure-JAX reference.
    ref = _ref_unet(x, params, len(TOPOLOGY))
    err = float(jnp.max(jnp.abs(out - ref)))
    scale = float(jnp.max(jnp.abs(ref)))
    assert err <= 1e-3 * scale + 1e-4, (err, scale)

    print("KERNEL_OK")
</pallas_src>

<mosaic_0001>
module attributes {stable_mosaic.version = 11 : i64} {
  func.func @probe(%arg0: memref<8x128xf32, #tpu.memory_space<vmem>>, %arg1: memref<8x128xf32, #tpu.memory_space<vmem>>) attributes {dimension_semantics = [], scalar_prefetch = 0 : i64, scratch_operands = 0 : i64, tpu.core_type = #tpu.core_type<tc>} {
    %c0 = arith.constant 0 : index
    %c0_0 = arith.constant 0 : index
    %0 = vector.load %arg0[%c0, %c0_0] : memref<8x128xf32, #tpu.memory_space<vmem>>, vector<8x128xf32>
    %c1_i32 = arith.constant 1 : i32
    %1 = tpu.dynamic_rotate %0 by %c1_i32 dim 1 : vector<8x128xf32>, i32 -> vector<8x128xf32>
    %c0_1 = arith.constant 0 : index
    %c0_2 = arith.constant 0 : index
    %2 = vector.load %arg1[%c0_1, %c0_2] : memref<8x128xf32, #tpu.memory_space<vmem>>, vector<8x128xf32>
    tpu.vector_store %arg1[%c0_1, %c0_2], %1 {strides = array<i32>} : memref<8x128xf32, #tpu.memory_space<vmem>>, vector<8x128xf32>,
    return
  }
}

</mosaic_0001>

<bundles_post_ra>
// kernel: tpu_custom_call.1
= control target key start
LH: loop header
LB: loop body
LE: loop exit
PB: predicated region body
PF: predicated region fallthrough
CT: control target
= control target key end

     0   :  { %6 = vsyncpa [#allocation3], 0  ;;  %s128_s0 = inlined_call_operand.hbm [shape: f32[8,128], index: 0, kind: input, shape index: {}]   ;;  %s129_s1 = inlined_call_operand.hbm [shape: f32[8,128], index: 1, kind: output, shape index: {}]  }
   0x1   :  { %7 = vsyncpa [#allocation4], 0  ;;  %s91_s6 = smov [#allocation2]   ;;  %s43_s10 = scalar_lea.hbm %s128_s0, 128 }
   0x2   :  { %s14_s7 = sshll.u32 %s91_s6, 4  ;;  %p44_p0 = scmp.ne.s32.totalorder %s128_s0, %s43_s10  ;;  %s15_s7 = int_to_ptr.vmem [resolvable:$true] %s14_s7 }
   0x3   :  { %p47_p1 = scmp.lt.u32.totalorder %s43_s10, %s128_s0 }
   0x5   :  { %p49_p2 = pnand %p47_p1, %p44_p0 }
   0x7   :  { %52 = shalt.err (!%p49_p2)
}
   0x8   :  { %s53_s15 = scalar_lea.vmem %s15_s7, 128  ;;  %p58_p4 = scmp.lt.s32.totalorder %s15_s7, %s15_s7 }
   0x9   :  { %p54_p3 = scmp.ne.s32.totalorder %s15_s7, %s53_s15  ;;  %p59_p5 = scmp.lt.s32.totalorder %s53_s15, %s53_s15 }
   0xb   :  { %p60_p6 = por %p59_p5, %p58_p4 }
   0xd   :  { %p61_p7 = pnand %p60_p6, %p54_p3 }
   0xf   :  { %64 = shalt.err (!%p61_p7)
}
  0x10   :  { %17 = dma.hbm_to_vmem [thread:$0]  %s128_s0, 128, %s15_s7, [#allocation3]  }
  0x11   :  { %87 = dma.done.wait [#allocation3], 128  }
  0x12   :  { %88 = vsyncadd [#allocation3], 4294967168  ;;  %v21_v0 = vld [vmem:[#allocation2] sm:$0xff]  ;;  %s92_s18 = smov 1   ;;  %s93_s19 = smov [#allocation5]  }
  0x13   :  { %22 = vrot.lane.b32.xlu0 %v21_v0, %s92_s18  ;;  %s31_s20 = sshll.u32 %s93_s19, 4  ;;  %s32_s20 = int_to_ptr.vmem [resolvable:$true] %s31_s20 }
  0x14   :  { %s65_s21 = scalar_lea.vmem %s32_s20, 128  ;;  %p70_p9 = scmp.lt.s32.totalorder %s32_s20, %s32_s20 }
  0x15   :  { %p66_p8 = scmp.ne.s32.totalorder %s32_s20, %s65_s21  ;;  %p71_p10 = scmp.lt.s32.totalorder %s65_s21, %s65_s21 }
  0x17   :  { %p72_p11 = por %p71_p10, %p70_p9 }
  0x19   :  { %p73_p12 = pnand %p72_p11, %p66_p8 }
  0x85   :  { %v23_v1 = vpop.permute.xlu0 %22 }
  0x86   :  { %24 = vst [vmem:[#allocation5] sm:$0xff] %v23_v1 }
  0x87   :  { %76 = shalt.err (!%p73_p12)
}
  0x88   :  { %s77_s0 = scalar_lea.hbm %s129_s1, 128 }
  0x89   :  { %p78_p13 = scmp.ne.s32.totalorder %s129_s1, %s77_s0  ;;  %p81_p0 = scmp.lt.u32.totalorder %s77_s0, %s129_s1 }
  0x8b   :  { %p83_p1 = pnand %p81_p0, %p78_p13 }
  0x8d   :  { %86 = shalt.err (!%p83_p1)
}
  0x8e   :  { %34 = dma.vmem_to_hbm [thread:$0]  %s32_s20, 128, %s129_s1, [#allocation4]  }
  0x8f   :  { %89 = dma.done.wait [#allocation4], 128  }
  0x90   :  { %90 = vsyncadd [#allocation4], 4294967168 }
  0x91   :  { %38 = vsyncpa [#allocation3], 1 }
  0x92   :  { %39 = vsyncpa [#allocation4], 1 }

</bundles_post_ra>
